<compile_context>
chip_gen: v5e
topology: v5e:2x2
jax: 0.10.0
libtpu: 0.0.40
codegen_flags: <defaults>
</compile_context>

<pallas_src>
import jax
import jax.numpy as jnp
from jax.experimental import pallas as pl
from jax.experimental.pallas import tpu as pltpu


def _round_up(n, m):
    return ((n + m - 1) // m) * m


def _sublane(dtype):
    """Rows per sublane group for this dtype (f32: 8, bf16: 16, int8/fp8: 32)."""
    return max(8, 32 // jnp.dtype(dtype).itemsize)


def _chip_defaults():
    """(default batch-tile rows, VMEM-limit cap in bytes) per TPU generation."""
    try:
        kind = jax.devices()[0].device_kind.lower()
    except Exception:
        kind = ""
    if "v5" in kind and ("lite" in kind or "v5e" in kind):
        return 256, 100 * 2**20     # v5e: 16 MiB default scoped VMEM, 1 vst slot
    if "v6" in kind:
        return 1024, 100 * 2**20    # v6e: 128 MiB physical VMEM
    if "v7" in kind:
        return 512, 60 * 2**20      # v7x: 64 MiB physical VMEM per TC
    return 512, 100 * 2**20


def gru_cell_kernel(x_ref, h_ref, wx_ref, wh_ref, bx_ref, bu_ref, out_ref):
    """Fused GRU cell: two wide MXU matmuls, elementwise gate math in f32."""
    hd = out_ref.shape[-1]     # true hidden width H
    hp = bu_ref.shape[-1]      # lane-padded per-gate width Hp (multiple of 128)

    x = x_ref[...]
    h = h_ref[...]

    # s_x = x @ [Wr_x | Wz_x | Wc] + [br | bz | bc]   -> (tm, 3*Hp), f32 acc
    s_x = jnp.dot(x, wx_ref[...], preferred_element_type=jnp.float32) + bx_ref[...]
    # s_h = h @ [Wr_h | Wz_h | Wu]                    -> (tm, 3*Hp), f32 acc
    s_h = jnp.dot(h, wh_ref[...], preferred_element_type=jnp.float32)

    # Gate slices land on 128-lane boundaries because Hp % 128 == 0.
    r = jax.nn.sigmoid(s_x[:, 0:hp] + s_h[:, 0:hp])
    z = jax.nn.sigmoid(s_x[:, hp:2 * hp] + s_h[:, hp:2 * hp])
    u = jnp.tanh(s_x[:, 2 * hp:3 * hp] + r * (s_h[:, 2 * hp:3 * hp] + bu_ref[...]))

    # new_h = z*h + (1-z)*u  ==  u + z*(h - u)
    u_h = u[:, :hd]
    z_h = z[:, :hd]
    hf = h.astype(jnp.float32)
    out_ref[...] = (u_h + z_h * (hf - u_h)).astype(out_ref.dtype)


def gru_cell(x, h, fused_params, *, block_b=None, alias_h=False):
    """x: [B, x_dim], h: [B, h_dim]; fused_params from fuse_params()."""
    B, x_dim = x.shape
    h_dim = h.shape[-1]
    wx = fused_params["wx"]   # (x_dim, 3*Hp)
    wh = fused_params["wh"]   # (h_dim, 3*Hp)
    bx = fused_params["bx"]   # (1, 3*Hp)   f32
    bu = fused_params["bu"]   # (1, Hp)     f32
    hp = bu.shape[-1]
    assert wx.shape == (x_dim, 3 * hp) and wh.shape == (h_dim, 3 * hp)

    # Activations travel in the weight dtype (bf16 halves HBM bytes); matmuls
    # still accumulate in f32 inside the kernel.
    wdtype = wx.dtype
    if x.dtype != wdtype:
        x = x.astype(wdtype)
    out_dtype = h.dtype
    if alias_h:
        out_dtype = h.dtype            # aliasing requires matching dtype; no cast
    elif h.dtype != wdtype:
        h = h.astype(wdtype)

    chip_block_b, vmem_cap = _chip_defaults()
    if block_b is None:
        block_b = chip_block_b

    # Batch tile: dtype-aware sublane rounding; >=2 (even) grid steps when the
    # batch allows it so v7x's two TensorCores both get work. No padding of
    # x/h: the ragged last block is masked by Pallas.
    sub = _sublane(x.dtype)
    if B <= sub:
        tm = B                          # single block == full (tiny) batch
    else:
        n_tiles = max(2, pl.cdiv(B, block_b))
        if n_tiles % 2:
            n_tiles += 1
        tm = _round_up(pl.cdiv(B, n_tiles), sub)
    grid = (pl.cdiv(B, tm),)

    # Explicit VMEM budget from the actual footprint (weights x2 to stay safe
    # if the single-buffered path falls back to default double buffering).
    bpe_w = jnp.dtype(wdtype).itemsize
    bpe_a = jnp.dtype(x.dtype).itemsize
    weight_bytes = (wx.size + wh.size) * bpe_w + (bx.size + bu.size) * bx.dtype.itemsize
    io_bytes = 2 * (tm * (x_dim + h_dim) * bpe_a
                    + tm * h_dim * jnp.dtype(out_dtype).itemsize)
    interm_bytes = tm * (3 * hp) * 4 * 2 + tm * hp * 4 * 4   # s_x, s_h, r/z/u/new_h (f32)
    vmem_limit = int(1.5 * (2 * weight_bytes + io_bytes + interm_bytes)) + (2 << 20)
    vmem_limit = max(16 * 2**20, min(vmem_limit, vmem_cap))

    cparams = pltpu.CompilerParams(
        dimension_semantics=("parallel",),       # shard batch tiles across TCs (v7x)
        vmem_limit_bytes=vmem_limit)

    def call(weight_pipeline_mode):
        wkw = {} if weight_pipeline_mode is None else dict(pipeline_mode=weight_pipeline_mode)
        in_specs = [
            pl.BlockSpec((tm, x_dim), lambda i: (i, 0)),               # x tile
            pl.BlockSpec((tm, h_dim), lambda i: (i, 0)),               # h tile
            pl.BlockSpec((x_dim, 3 * hp), lambda i: (0, 0), **wkw),    # Wx (resident)
            pl.BlockSpec((h_dim, 3 * hp), lambda i: (0, 0), **wkw),    # Wh (resident)
            pl.BlockSpec((1, 3 * hp), lambda i: (0, 0), **wkw),        # bx (resident)
            pl.BlockSpec((1, hp), lambda i: (0, 0), **wkw),            # bu (resident)
        ]
        kwargs = {}
        if alias_h:
            kwargs["input_output_aliases"] = {1: 0}   # write new_h over h in place
        return pl.pallas_call(
            gru_cell_kernel,
            out_shape=jax.ShapeDtypeStruct((B, h_dim), out_dtype),
            grid=grid,
            in_specs=in_specs,
            out_specs=pl.BlockSpec((tm, h_dim), lambda i: (i, 0)),
            compiler_params=cparams,
            **kwargs,
        )(x, h, wx, wh, bx, bu)

    try:
        # Constant index_map -> single-buffer the resident weights (halves their
        # VMEM footprint; matters most on v7x's 64 MiB VMEM).
        return call(pl.Buffered(1))
    except Exception:
        # Fallback for JAX versions that reject pipeline_mode / single buffering.
        return call(None)


def init_params(key, x_dim, h_dim, dtype=jnp.float32):
    """nn.Linear-style init. W stored transposed to (in, out); the r/z weights
    are split into their x-part and h-part of the concatenated input."""
    keys = jax.random.split(key, 8)

    def linear(kw, kb, fan_in, fan_out):
        bound = 1.0 / jnp.sqrt(jnp.asarray(fan_in, jnp.float32))
        w = jax.random.uniform(kw, (fan_in, fan_out), dtype, -bound, bound)
        b = jax.random.uniform(kb, (1, fan_out), dtype, -bound, bound)
        return w, b

    wr, br = linear(keys[0], keys[1], x_dim + h_dim, h_dim)
    wz, bz = linear(keys[2], keys[3], x_dim + h_dim, h_dim)
    wc, bc = linear(keys[4], keys[5], x_dim, h_dim)
    wu, bu = linear(keys[6], keys[7], h_dim, h_dim)

    return dict(
        wr_x=wr[:x_dim], wr_h=wr[x_dim:], br=br,
        wz_x=wz[:x_dim], wz_h=wz[x_dim:], bz=bz,
        wc=wc, bc=bc,
        wu=wu, bu=bu,
    )


def fuse_params(p, *, dtype=jnp.bfloat16, lane=128):
    """Pack the four Linear layers into two wide matmul operands + f32 biases.

    Weights are cast to `dtype` (bf16 by default; matmuls accumulate in f32).
    Each gate's output columns are zero-padded to a multiple of 128 lanes so
    the in-kernel r/z/u slices are lane-aligned (a no-op when h_dim%128==0)."""
    h_dim = p["bu"].shape[-1]
    hp = _round_up(h_dim, lane)

    def padc(a):
        return jnp.pad(a, ((0, 0), (0, hp - a.shape[-1])))

    wx = jnp.concatenate([padc(p["wr_x"]), padc(p["wz_x"]), padc(p["wc"])], axis=1)
    wh = jnp.concatenate([padc(p["wr_h"]), padc(p["wz_h"]), padc(p["wu"])], axis=1)
    bx = jnp.concatenate([padc(p["br"]), padc(p["bz"]), padc(p["bc"])], axis=1)
    bu = padc(p["bu"])
    return dict(wx=wx.astype(dtype), wh=wh.astype(dtype),
                bx=bx.astype(jnp.float32), bu=bu.astype(jnp.float32))


def gru_cell_ref(x, h, p):
    """Pure-JAX reference matching the PyTorch forward exactly (unfused)."""
    r = jax.nn.sigmoid(x @ p["wr_x"] + h @ p["wr_h"] + p["br"])
    z = jax.nn.sigmoid(x @ p["wz_x"] + h @ p["wz_h"] + p["bz"])
    u = jnp.tanh((x @ p["wc"] + p["bc"]) + r * (h @ p["wu"] + p["bu"]))
    return z * h + (1.0 - z) * u


if __name__ == "__main__":
    B, x_dim, h_dim = 16, 16, 32

    key = jax.random.PRNGKey(0)
    kx, kh, kp = jax.random.split(key, 3)

    x = jax.random.normal(kx, (B, x_dim), jnp.float32)
    h = jax.random.normal(kh, (B, h_dim), jnp.float32)
    params = init_params(kp, x_dim, h_dim)
    ref = gru_cell_ref(x, h, params)

    # Exact-semantics check: f32 operands, tight tolerance (exercises grid=2).
    fused_f32 = fuse_params(params, dtype=jnp.float32)
    out_f32 = gru_cell(x, h, fused_f32)
    jax.block_until_ready(out_f32)
    assert out_f32.shape == (B, h_dim)
    assert jnp.allclose(out_f32, ref, atol=1e-4, rtol=1e-4), "f32 mismatch vs reference"

    # Performance path: bf16 weights/activations, f32 accumulation.
    fused_bf16 = fuse_params(params, dtype=jnp.bfloat16)
    out_bf16 = gru_cell(x, h, fused_bf16)
    jax.block_until_ready(out_bf16)
    assert out_bf16.shape == (B, h_dim)
    assert jnp.allclose(out_bf16.astype(jnp.float32), ref, atol=5e-2, rtol=5e-2), \
        "bf16 mismatch vs reference"

    print("KERNEL_OK")
</pallas_src>

<mosaic_0001>
module attributes {stable_mosaic.version = 11 : i64} {
  func.func @gru_cell_kernel(%arg0: i32, %arg1: memref<8x16xf32, #tpu.memory_space<vmem>>, %arg2: memref<8x32xf32, #tpu.memory_space<vmem>>, %arg3: memref<16x384xf32, #tpu.memory_space<vmem>>, %arg4: memref<32x384xf32, #tpu.memory_space<vmem>>, %arg5: memref<1x384xf32, #tpu.memory_space<vmem>>, %arg6: memref<1x128xf32, #tpu.memory_space<vmem>>, %arg7: memref<8x32xf32, #tpu.memory_space<vmem>>) attributes {dimension_semantics = [#tpu.dimension_semantics<parallel>], iteration_bounds = array<i64: 2>, scalar_prefetch = 0 : i64, scratch_operands = 0 : i64, tpu.core_type = #tpu.core_type<tc>, window_params = [{transform_indices = @transform_0, window_bounds = array<i64: 8, 16>}, {transform_indices = @transform_1, window_bounds = array<i64: 8, 32>}, {pipeline_mode = #tpu.pipeline_mode<synchronous>, transform_indices = @transform_2, window_bounds = array<i64: 16, 384>}, {pipeline_mode = #tpu.pipeline_mode<synchronous>, transform_indices = @transform_3, window_bounds = array<i64: 32, 384>}, {pipeline_mode = #tpu.pipeline_mode<synchronous>, transform_indices = @transform_4, window_bounds = array<i64: 1, 384>}, {pipeline_mode = #tpu.pipeline_mode<synchronous>, transform_indices = @transform_5, window_bounds = array<i64: 1, 128>}, {transform_indices = @transform_6, window_bounds = array<i64: 8, 32>}]} {
    %c0 = arith.constant 0 : index
    %c0_0 = arith.constant 0 : index
    %0 = vector.load %arg1[%c0, %c0_0] : memref<8x16xf32, #tpu.memory_space<vmem>>, vector<8x16xf32>
    %c0_1 = arith.constant 0 : index
    %c0_2 = arith.constant 0 : index
    %1 = vector.load %arg2[%c0_1, %c0_2] : memref<8x32xf32, #tpu.memory_space<vmem>>, vector<8x32xf32>
    %c0_3 = arith.constant 0 : index
    %c0_4 = arith.constant 0 : index
    %2 = vector.load %arg3[%c0_3, %c0_4] : memref<16x384xf32, #tpu.memory_space<vmem>>, vector<16x384xf32>
    %cst = arith.constant dense<0.000000e+00> : vector<8x384xf32>
    %3 = tpu.matmul %0, %2, %cst {dimension_numbers = #tpu.dot_dimension_numbers<[1], [0], [0], [1], [0, 0, 1, 1], [], []>} : vector<8x16xf32>, vector<16x384xf32>, vector<8x384xf32> -> vector<8x384xf32>
    %c0_5 = arith.constant 0 : index
    %c0_6 = arith.constant 0 : index
    %4 = vector.load %arg5[%c0_5, %c0_6] : memref<1x384xf32, #tpu.memory_space<vmem>>, vector<1x384xf32>
    %5 = vector.broadcast %4 : vector<1x384xf32> to vector<8x384xf32>
    %6 = arith.addf %3, %5 : vector<8x384xf32>
    %c0_7 = arith.constant 0 : index
    %c0_8 = arith.constant 0 : index
    %7 = vector.load %arg4[%c0_7, %c0_8] : memref<32x384xf32, #tpu.memory_space<vmem>>, vector<32x384xf32>
    %cst_9 = arith.constant dense<0.000000e+00> : vector<8x384xf32>
    %8 = tpu.matmul %1, %7, %cst_9 {dimension_numbers = #tpu.dot_dimension_numbers<[1], [0], [0], [1], [0, 0, 1, 1], [], []>} : vector<8x32xf32>, vector<32x384xf32>, vector<8x384xf32> -> vector<8x384xf32>
    %9 = vector.extract_strided_slice %6 {offsets = [0, 0], sizes = [8, 128], strides = [1, 1]} : vector<8x384xf32> to vector<8x128xf32>
    %10 = vector.extract_strided_slice %8 {offsets = [0, 0], sizes = [8, 128], strides = [1, 1]} : vector<8x384xf32> to vector<8x128xf32>
    %11 = arith.addf %9, %10 : vector<8x128xf32>
    %12 = arith.negf %11 : vector<8x128xf32>
    %13 = math.exp %12 : vector<8x128xf32>
    %cst_10 = arith.constant 1.000000e+00 : f32
    %14 = vector.broadcast %cst_10 : f32 to vector<8x128xf32>
    %15 = arith.addf %14, %13 : vector<8x128xf32>
    %16 = arith.divf %14, %15 : vector<8x128xf32>
    %17 = vector.extract_strided_slice %6 {offsets = [0, 128], sizes = [8, 128], strides = [1, 1]} : vector<8x384xf32> to vector<8x128xf32>
    %18 = vector.extract_strided_slice %8 {offsets = [0, 128], sizes = [8, 128], strides = [1, 1]} : vector<8x384xf32> to vector<8x128xf32>
    %19 = arith.addf %17, %18 : vector<8x128xf32>
    %20 = arith.negf %19 : vector<8x128xf32>
    %21 = math.exp %20 : vector<8x128xf32>
    %cst_11 = arith.constant 1.000000e+00 : f32
    %22 = vector.broadcast %cst_11 : f32 to vector<8x128xf32>
    %23 = arith.addf %22, %21 : vector<8x128xf32>
    %24 = arith.divf %22, %23 : vector<8x128xf32>
    %25 = vector.extract_strided_slice %6 {offsets = [0, 256], sizes = [8, 128], strides = [1, 1]} : vector<8x384xf32> to vector<8x128xf32>
    %26 = vector.extract_strided_slice %8 {offsets = [0, 256], sizes = [8, 128], strides = [1, 1]} : vector<8x384xf32> to vector<8x128xf32>
    %c0_12 = arith.constant 0 : index
    %c0_13 = arith.constant 0 : index
    %27 = vector.load %arg6[%c0_12, %c0_13] : memref<1x128xf32, #tpu.memory_space<vmem>>, vector<1x128xf32>
    %28 = vector.broadcast %27 : vector<1x128xf32> to vector<8x128xf32>
    %29 = arith.addf %26, %28 : vector<8x128xf32>
    %30 = arith.mulf %16, %29 : vector<8x128xf32>
    %31 = arith.addf %25, %30 : vector<8x128xf32>
    %32 = math.tanh %31 : vector<8x128xf32>
    %33 = vector.extract_strided_slice %32 {offsets = [0, 0], sizes = [8, 32], strides = [1, 1]} : vector<8x128xf32> to vector<8x32xf32>
    %34 = vector.extract_strided_slice %24 {offsets = [0, 0], sizes = [8, 32], strides = [1, 1]} : vector<8x128xf32> to vector<8x32xf32>
    %35 = arith.subf %1, %33 : vector<8x32xf32>
    %36 = arith.mulf %34, %35 : vector<8x32xf32>
    %37 = arith.addf %33, %36 : vector<8x32xf32>
    %c0_14 = arith.constant 0 : index
    %c0_15 = arith.constant 0 : index
    %38 = vector.load %arg7[%c0_14, %c0_15] : memref<8x32xf32, #tpu.memory_space<vmem>>, vector<8x32xf32>
    tpu.vector_store %arg7[%c0_14, %c0_15], %37 {strides = array<i32>} : memref<8x32xf32, #tpu.memory_space<vmem>>, vector<8x32xf32>,
    return
  }
  func.func @transform_0(%arg0: i32) -> (i32, i32) {
    %c0_i32 = arith.constant 0 : i32
    %c0_i32_0 = arith.constant 0 : i32
    return %arg0, %c0_i32 : i32, i32
  }
  func.func @transform_1(%arg0: i32) -> (i32, i32) {
    %c0_i32 = arith.constant 0 : i32
    %c0_i32_0 = arith.constant 0 : i32
    return %arg0, %c0_i32 : i32, i32
  }
  func.func @transform_2(%arg0: i32) -> (i32, i32) {
    %c0_i32 = arith.constant 0 : i32
    %c0_i32_0 = arith.constant 0 : i32
    %c0_i32_1 = arith.constant 0 : i32
    return %c0_i32, %c0_i32_0 : i32, i32
  }
  func.func @transform_3(%arg0: i32) -> (i32, i32) {
    %c0_i32 = arith.constant 0 : i32
    %c0_i32_0 = arith.constant 0 : i32
    %c0_i32_1 = arith.constant 0 : i32
    return %c0_i32, %c0_i32_0 : i32, i32
  }
  func.func @transform_4(%arg0: i32) -> (i32, i32) {
    %c0_i32 = arith.constant 0 : i32
    %c0_i32_0 = arith.constant 0 : i32
    %c0_i32_1 = arith.constant 0 : i32
    return %c0_i32, %c0_i32_0 : i32, i32
  }
  func.func @transform_5(%arg0: i32) -> (i32, i32) {
    %c0_i32 = arith.constant 0 : i32
    %c0_i32_0 = arith.constant 0 : i32
    %c0_i32_1 = arith.constant 0 : i32
    return %c0_i32, %c0_i32_0 : i32, i32
  }
  func.func @transform_6(%arg0: i32) -> (i32, i32) {
    %c0_i32 = arith.constant 0 : i32
    %c0_i32_0 = arith.constant 0 : i32
    return %arg0, %c0_i32 : i32, i32
  }
}

module attributes {stable_mosaic.version = 11 : i64} {
  func.func @gru_cell_kernel(%arg0: i32, %arg1: memref<8x16xf32, #tpu.memory_space<vmem>>, %arg2: memref<8x32xf32, #tpu.memory_space<vmem>>, %arg3: memref<16x384xf32, #tpu.memory_space<vmem>>, %arg4: memref<32x384xf32, #tpu.memory_space<vmem>>, %arg5: memref<1x384xf32, #tpu.memory_space<vmem>>, %arg6: memref<1x128xf32, #tpu.memory_space<vmem>>, %arg7: memref<8x32xf32, #tpu.memory_space<vmem>>) attributes {dimension_semantics = [#tpu.dimension_semantics<parallel>], iteration_bounds = array<i64: 2>, scalar_prefetch = 0 : i64, scratch_operands = 0 : i64, tpu.core_type = #tpu.core_type<tc>, window_params = [{transform_indices = @transform_0, window_bounds = array<i64: 8, 16>}, {transform_indices = @transform_1, window_bounds = array<i64: 8, 32>}, {pipeline_mode = #tpu.pipeline_mode<synchronous>, transform_indices = @transform_2, window_bounds = array<i64: 16, 384>}, {pipeline_mode = #tpu.pipeline_mode<synchronous>, transform_indices = @transform_3, window_bounds = array<i64: 32, 384>}, {pipeline_mode = #tpu.pipeline_mode<synchronous>, transform_indices = @transform_4, window_bounds = array<i64: 1, 384>}, {pipeline_mode = #tpu.pipeline_mode<synchronous>, transform_indices = @transform_5, window_bounds = array<i64: 1, 128>}, {transform_indices = @transform_6, window_bounds = array<i64: 8, 32>}]} {
    %c0 = arith.constant 0 : index
    %c0_0 = arith.constant 0 : index
    %0 = vector.load %arg1[%c0, %c0_0] : memref<8x16xf32, #tpu.memory_space<vmem>>, vector<8x16xf32>
    %c0_1 = arith.constant 0 : index
    %c0_2 = arith.constant 0 : index
    %1 = vector.load %arg2[%c0_1, %c0_2] : memref<8x32xf32, #tpu.memory_space<vmem>>, vector<8x32xf32>
    %c0_3 = arith.constant 0 : index
    %c0_4 = arith.constant 0 : index
    %2 = vector.load %arg3[%c0_3, %c0_4] : memref<16x384xf32, #tpu.memory_space<vmem>>, vector<16x384xf32>
    %cst = arith.constant dense<0.000000e+00> : vector<8x384xf32>
    %3 = tpu.matmul %0, %2, %cst {dimension_numbers = #tpu.dot_dimension_numbers<[1], [0], [0], [1], [0, 0, 1, 1], [], []>} : vector<8x16xf32>, vector<16x384xf32>, vector<8x384xf32> -> vector<8x384xf32>
    %c0_5 = arith.constant 0 : index
    %c0_6 = arith.constant 0 : index
    %4 = vector.load %arg5[%c0_5, %c0_6] : memref<1x384xf32, #tpu.memory_space<vmem>>, vector<1x384xf32>
    %5 = vector.broadcast %4 : vector<1x384xf32> to vector<8x384xf32>
    %6 = arith.addf %3, %5 : vector<8x384xf32>
    %c0_7 = arith.constant 0 : index
    %c0_8 = arith.constant 0 : index
    %7 = vector.load %arg4[%c0_7, %c0_8] : memref<32x384xf32, #tpu.memory_space<vmem>>, vector<32x384xf32>
    %cst_9 = arith.constant dense<0.000000e+00> : vector<8x384xf32>
    %8 = tpu.matmul %1, %7, %cst_9 {dimension_numbers = #tpu.dot_dimension_numbers<[1], [0], [0], [1], [0, 0, 1, 1], [], []>} : vector<8x32xf32>, vector<32x384xf32>, vector<8x384xf32> -> vector<8x384xf32>
    %9 = vector.extract_strided_slice %6 {offsets = [0, 0], sizes = [8, 128], strides = [1, 1]} : vector<8x384xf32> to vector<8x128xf32>
    %10 = vector.extract_strided_slice %8 {offsets = [0, 0], sizes = [8, 128], strides = [1, 1]} : vector<8x384xf32> to vector<8x128xf32>
    %11 = arith.addf %9, %10 : vector<8x128xf32>
    %12 = arith.negf %11 : vector<8x128xf32>
    %13 = math.exp %12 : vector<8x128xf32>
    %cst_10 = arith.constant 1.000000e+00 : f32
    %14 = vector.broadcast %cst_10 : f32 to vector<8x128xf32>
    %15 = arith.addf %14, %13 : vector<8x128xf32>
    %16 = arith.divf %14, %15 : vector<8x128xf32>
    %17 = vector.extract_strided_slice %6 {offsets = [0, 128], sizes = [8, 128], strides = [1, 1]} : vector<8x384xf32> to vector<8x128xf32>
    %18 = vector.extract_strided_slice %8 {offsets = [0, 128], sizes = [8, 128], strides = [1, 1]} : vector<8x384xf32> to vector<8x128xf32>
    %19 = arith.addf %17, %18 : vector<8x128xf32>
    %20 = arith.negf %19 : vector<8x128xf32>
    %21 = math.exp %20 : vector<8x128xf32>
    %cst_11 = arith.constant 1.000000e+00 : f32
    %22 = vector.broadcast %cst_11 : f32 to vector<8x128xf32>
    %23 = arith.addf %22, %21 : vector<8x128xf32>
    %24 = arith.divf %22, %23 : vector<8x128xf32>
    %25 = vector.extract_strided_slice %6 {offsets = [0, 256], sizes = [8, 128], strides = [1, 1]} : vector<8x384xf32> to vector<8x128xf32>
    %26 = vector.extract_strided_slice %8 {offsets = [0, 256], sizes = [8, 128], strides = [1, 1]} : vector<8x384xf32> to vector<8x128xf32>
    %c0_12 = arith.constant 0 : index
    %c0_13 = arith.constant 0 : index
    %27 = vector.load %arg6[%c0_12, %c0_13] : memref<1x128xf32, #tpu.memory_space<vmem>>, vector<1x128xf32>
    %28 = vector.broadcast %27 : vector<1x128xf32> to vector<8x128xf32>
    %29 = arith.addf %26, %28 : vector<8x128xf32>
    %30 = arith.mulf %16, %29 : vector<8x128xf32>
    %31 = arith.addf %25, %30 : vector<8x128xf32>
    %32 = math.tanh %31 : vector<8x128xf32>
    %33 = vector.extract_strided_slice %32 {offsets = [0, 0], sizes = [8, 32], strides = [1, 1]} : vector<8x128xf32> to vector<8x32xf32>
    %34 = vector.extract_strided_slice %24 {offsets = [0, 0], sizes = [8, 32], strides = [1, 1]} : vector<8x128xf32> to vector<8x32xf32>
    %35 = arith.subf %1, %33 : vector<8x32xf32>
    %36 = arith.mulf %34, %35 : vector<8x32xf32>
    %37 = arith.addf %33, %36 : vector<8x32xf32>
    %c0_14 = arith.constant 0 : index
    %c0_15 = arith.constant 0 : index
    %38 = vector.load %arg7[%c0_14, %c0_15] : memref<8x32xf32, #tpu.memory_space<vmem>>, vector<8x32xf32>
    tpu.vector_store %arg7[%c0_14, %c0_15], %37 {strides = array<i32>} : memref<8x32xf32, #tpu.memory_space<vmem>>, vector<8x32xf32>,
    return
  }
  func.func @transform_0(%arg0: i32) -> (i32, i32) {
    %c0_i32 = arith.constant 0 : i32
    %c0_i32_0 = arith.constant 0 : i32
    return %arg0, %c0_i32 : i32, i32
  }
  func.func @transform_1(%arg0: i32) -> (i32, i32) {
    %c0_i32 = arith.constant 0 : i32
    %c0_i32_0 = arith.constant 0 : i32
    return %arg0, %c0_i32 : i32, i32
  }
  func.func @transform_2(%arg0: i32) -> (i32, i32) {
    %c0_i32 = arith.constant 0 : i32
    %c0_i32_0 = arith.constant 0 : i32
    %c0_i32_1 = arith.constant 0 : i32
    return %c0_i32, %c0_i32_0 : i32, i32
  }
  func.func @transform_3(%arg0: i32) -> (i32, i32) {
    %c0_i32 = arith.constant 0 : i32
    %c0_i32_0 = arith.constant 0 : i32
    %c0_i32_1 = arith.constant 0 : i32
    return %c0_i32, %c0_i32_0 : i32, i32
  }
  func.func @transform_4(%arg0: i32) -> (i32, i32) {
    %c0_i32 = arith.constant 0 : i32
    %c0_i32_0 = arith.constant 0 : i32
    %c0_i32_1 = arith.constant 0 : i32
    return %c0_i32, %c0_i32_0 : i32, i32
  }
  func.func @transform_5(%arg0: i32) -> (i32, i32) {
    %c0_i32 = arith.constant 0 : i32
    %c0_i32_0 = arith.constant 0 : i32
    %c0_i32_1 = arith.constant 0 : i32
    return %c0_i32, %c0_i32_0 : i32, i32
  }
  func.func @transform_6(%arg0: i32) -> (i32, i32) {
    %c0_i32 = arith.constant 0 : i32
    %c0_i32_0 = arith.constant 0 : i32
    return %arg0, %c0_i32 : i32, i32
  }
}

</mosaic_0001>

<bundles_post_ra>
// kernel: tpu_custom_call.1
= control target key start
LH: loop header
LB: loop body
LE: loop exit
PB: predicated region body
PF: predicated region fallthrough
CT: control target
= control target key end

     0   :  { %s1228_s0 = inlined_call_operand.hbm [shape: f32[16,16], index: 0, kind: input, shape index: {}]   ;;  %s1229_s1 = inlined_call_operand.hbm [shape: f32[16,32], index: 1, kind: input, shape index: {}]   ;;  %s1230_s2 = inlined_call_operand.hbm [shape: f32[16,384], index: 2, kind: input, shape index: {}]   ;;  %s1231_s3 = inlined_call_operand.hbm [shape: f32[32,384], index: 3, kind: input, shape index: {}]   ;;  %s1232_s4 = inlined_call_operand.vmem [shape: f32[1,384], index: 4, kind: input, shape index: {}]   ;;  %s1233_s5 = inlined_call_operand.vmem [shape: f32[1,128], index: 5, kind: input, shape index: {}]   ;;  %s1234_s6 = inlined_call_operand.hbm [shape: f32[16,32], index: 6, kind: output, shape index: {}]  }
   0x1   :  { %1238 = sst [smem:[#allocation19_spill]] %s1230_s2 }
   0x2   :  { %1239 = sst [smem:[#allocation20_spill]] %s1231_s3 }
   0x3   :  { %11 = vsyncpa [#allocation3], 0 }
   0x4   :  { %13 = vsyncpa [#allocation3 + $0x1], 0 }
   0x5   :  { %14 = vsyncpa [#allocation6], 0 }
   0x6   :  { %16 = vsyncpa [#allocation6 + $0x1], 0 }
   0x7   :  { %17 = vsyncpa [#allocation9], 0 }
   0x8   :  { %18 = vsyncpa [#allocation4], 0 }
   0x9   :  { %20 = vsyncpa [#allocation4 + $0x1], 0  ;;  %s1028_s21 = smov 0   ;;  %s1030_s22 = smov 0  }
   0xa   :  { %s1032_s23 = smov 0   ;;  %s1034_s24 = smov 0  }
   0xb LB: > { %1240 = sst [smem:[#allocation16_spill]] %s983_s23  ;;  %s1052_s28 = sadd.s32 4294967295, %s987_s24   ;;  %s987_s24 = sphi %s1034_s24, %s1252_s24   ;;  %s983_s23 = sphi %s1032_s23, %s1254_s23   ;;  %s979_s22 = sphi %s1030_s22, %s1256_s22   ;;  %s975_s21 = sphi %s1028_s21, %s1255_s21  }
   0xc   : > { %s1241_s2 = sld [smem:[#allocation19_spill]]  ;;  %p678_p0 = scmp.ge.s32.totalorder %s987_s24, 1 }
   0xd   : > { %p47_p1 = scmp.eq.s32.totalorder %s1052_s28, 0  ;;  %p193_p2 = scmp.lt.s32.totalorder %s987_s24, 3 }
   0xe   : > { %s989_s30 = smov [#allocation7]   ;;  %s1243_s3 = sld [smem:[#allocation20_spill]] }
   0xf   : > { %p1057_p3 = pnand %p678_p0, %p193_p2  ;;  %s206_s7 = sshll.u32 %s989_s30, 4  ;;  %s207_s7 = int_to_ptr.vmem [resolvable:$true] %s206_s7 }
  0x10   : > { %s990_s11 = smov [#allocation8]   ;;  %s991_s13 = smov 384  }
  0x11   : > { %p718_p4 = pneg %p1057_p3  ;;  %s220_s12 = sshll.u32 %s990_s11, 4  ;;  %s221_s12 = int_to_ptr.vmem [resolvable:$true] %s220_s12 }
  0x12   : > { %s204_s27 = sshll.u32 %s1241_s2, 4  ;;  %s992_s14 = smov 24   ;;  %s205_s27 = int_to_ptr.hbm [resolvable:$true] %s204_s27 }
  0x13   : > { %p719_p6 = pnand %p718_p4, %p47_p1  ;;  %s677_s15 = sadd.s32 4294967294, %s987_s24  }
  0x14   : > { %s218_s10 = sshll.u32 %s1243_s3, 4  ;;  %s1071_s16 = sadd.s32 1, %s987_s24   ;;  %s219_s10 = int_to_ptr.hbm [resolvable:$true] %s218_s10 }
  0x15   : > { %721 = dma.hbm_to_vmem [thread:$0]  (!%p719_p6), %s205_s27, 768, %s207_s7, [#allocation6], %s991_s13, %s991_s13, %s992_s14  }
  0x16   : > { %724 = dma.hbm_to_vmem [thread:$0]  (!%p719_p6), %s219_s10, 1536, %s221_s12, [#allocation9], %s991_s13, %s991_s13, %s992_s14  }
  0x17   : > { %1244 = sst [smem:[#allocation17_spill]] %s1071_s16  ;;  %s30_s17 = ssub.s32 %s987_s24, %s1071_s16 }
  0x18   : > { %s33_s18 = sadd.s32 1, %s983_s23  ;;  %p31_p7 = scmp.eq.s32.totalorder %s30_s17, 0 }
  0x19   : > { %p40_p8 = scmp.ne.s32.totalorder %s983_s23, %s979_s22  ;;  %p41_p9 = scmp.eq.s32.totalorder %s987_s24, 0 }
  0x1a   : > { %p46_p10 = scmp.ne.s32.totalorder %s979_s22, %s975_s21  ;;  %p180_p13 = scmp.eq.s32.totalorder %s1052_s28, 1 }
  0x1b   : > { %s1082_s19 = scalar_select %p31_p7, %s983_s23, %s33_s18  }
  0x1c   : > { %p1084_p11 = por %p41_p9, %p40_p8  ;;  %p1090_p12 = por %p47_p1, %p46_p10 }
  0x1d   : > { %1245 = sst [smem:[#allocation18_spill]] %s1082_s19  ;;  %p186_p0 = scmp.eq.s32.totalorder %s677_s15, 1 }
  0x1e   : > { %p738_p2 = scmp.lt.s32.totalorder %s987_s24, 2  ;;  %s240_s26 = sand.u32 1, %s983_s23  }
  0x1f   : > { %p1097_p4 = por %p180_p13, %p40_p8  ;;  %p1101_p6 = por %p186_p0, %p46_p10 }
  0x20   : > { %s1105_s7 = sshll.u32 %s240_s26, 3  ;;  %s683_s8 = sshll.u32 %s987_s24, 3 }
  0x21   : > { %s248_s11 = scalar_lea.hbm %s1228_s0, %s683_s8  ;;  %s244_s12 = scalar_lea.vmem [#allocation2], %s1105_s7 }
  0x22   : > { %s252_s13 = sshll.u32 %s244_s12, 4  ;;  %s250_s14 = sshll.u32 %s248_s11, 4  ;;  %s253_s13 = int_to_ptr.vmem [resolvable:$true] %s252_s13  ;;  %s251_s14 = int_to_ptr.hbm [resolvable:$true] %s250_s14 }
  0x23   : > { %p1114_p7 = pnand %p738_p2, %p1084_p11  ;;  %s267_s2 = scalar_lea.hbm %s1229_s1, %s683_s8 }
  0x24   : > { %s259_s3 = sand.u32 1, %s987_s24   ;;  %s241_s19 = scalar_lea.sflag [#allocation3], %s240_s26 }
  0x25   : > { %s849_s9 = sshra.s32 %s251_s14, 4  ;;  %p853_p9 = pneg %p1114_p7  ;;  %s850_s9 = int_to_ptr.hbm [resolvable:$true] %s849_s9 }
  0x26   : > { %s851_s10 = scalar_lea.hbm %s850_s9, 8  ;;  %s856_s12 = scalar_lea.hbm %s1228_s0, 16 }
  0x27   : > { %p852_p8 = scmp.ne.s32.totalorder %s850_s9, %s851_s10  ;;  %p857_p13 = scmp.lt.s32.totalorder %s850_s9, %s1228_s0 }
  0x28   : > { %p858_p0 = scmp.lt.s32.totalorder %s856_s12, %s851_s10 }
  0x29   : > { %p854_p10 = pnand %p853_p9, %p852_p8 }
  0x2a   : > { %p859_p2 = por %p858_p0, %p857_p13 }
  0x2b   : > { %p855_p11 = pneg %p854_p10 }
  0x2d   : > { %p860_p5 = pnand %p859_p2, %p855_p11 }
  0x2f   : > { %863 = shalt.err (!%p860_p5)
}
  0x30   : > { %728 = dma.hbm_to_vmem [thread:$0]  (!%p1114_p7), %s251_s14, 128, %s253_s13, %s241_s19  }
  0x31   : > { %s269_s26 = sshll.u32 %s267_s2, 4  ;;  %s263_s8 = scalar_lea.vmem [#allocation5], %s1105_s7  ;;  %s270_s26 = int_to_ptr.hbm [resolvable:$true] %s269_s26 }
  0x32   : > { %s271_s23 = sshll.u32 %s263_s8, 4  ;;  %s260_s20 = scalar_lea.sflag [#allocation6], %s259_s3  ;;  %s272_s23 = int_to_ptr.vmem [resolvable:$true] %s271_s23 }
  0x33   : > { %s879_s11 = sshra.s32 %s270_s26, 4  ;;  %s886_s12 = scalar_lea.hbm %s1229_s1, 16  ;;  %s880_s11 = int_to_ptr.hbm [resolvable:$true] %s879_s11 }
  0x34   : > { %s881_s16 = scalar_lea.hbm %s880_s11, 8  ;;  %p887_p5 = scmp.lt.s32.totalorder %s880_s11, %s1229_s1 }
  0x35   : > { %p882_p8 = scmp.ne.s32.totalorder %s880_s11, %s881_s16  ;;  %p888_p13 = scmp.lt.s32.totalorder %s886_s12, %s881_s16 }
  0x37   : > { %p884_p10 = pnand %p882_p8, %p853_p9  ;;  %p889_p0 = por %p888_p13, %p887_p5 }
  0x39   : > { %p885_p11 = pneg %p884_p10 }
  0x3b   : > { %p890_p2 = pnand %p889_p0, %p885_p11 }
  0x3d   : > { %893 = shalt.err (!%p890_p2)
}
  0x3e   : > { %731 = dma.hbm_to_vmem [thread:$0]  (!%p1114_p7), %s270_s26, 128, %s272_s23, %s260_s20  }
  0x3f   : > { %280 = sbr.rel (%p1057_p3) target bundleno = 267 (0x10b), region = 44  ;;  %s1150_s2 = sand.u32 (!%p1057_p3), 1, %s979_s22  }
  0x40   : > { %s1153_s3 = sshll.u32 (!%p1057_p3), %s1150_s2, 3  ;;  %s283_s7 = scalar_lea.sflag (!%p1057_p3), [#allocation3], %s1150_s2 }
  0x41   : > { %s286_s16 = scalar_lea.vmem (!%p1057_p3), [#allocation2], %s1153_s3 }
  0x44   : > { %954 = dma.done.wait (%p1090_p12), %s283_s7, 128  }
  0x45   : > { %956 = vsyncadd (%p1090_p12), %s283_s7, 4294967168  ;;  %s292_s23 = sand.u32 1, %s1052_s28   ;;  %s296_s13 = scalar_lea.vmem [#allocation5], %s1153_s3 }
  0x46   : > { %s293_s29 = scalar_lea.sflag [#allocation6], %s292_s23 }
  0x47   : > { %958 = dma.done.wait (%p1090_p12), %s293_s29, 128  }
  0x48   : > { %960 = vsyncadd (%p1090_p12), %s293_s29, 4294967168 }
  0x49   : > { %962 = dma.done.wait (%p47_p1), [#allocation6], 768  }
  0x4a   : > { %964 = vsyncadd (%p47_p1), [#allocation6], 4294966528 }
  0x4b   : > { %966 = dma.done.wait (%p47_p1), [#allocation9], 1536  }
  0x4c   : > { %968 = vsyncadd (%p47_p1), [#allocation9], 4294965760  ;;  %v430_v0 = vld [vmem:[#allocation8 + $0x48] sm:$0xff]  ;;  %v427_v2 = vld [vmem:[#allocation8 + $0x30] sm:$0xff]  ;;  %vm357_vm0 = vcmask 130048   ;;  %vm433_vm1 = vcmask 261120  }
  0x4d   : > { %v346_v1 = vld [vmem:[#allocation7 + $0x18] sm:$0xff]  ;;  %449 = vmatpush.msra.mxu3 %v430_v0  ;;  %v343_v3 = vld [vmem:[#allocation7] sm:$0xff]  ;;  %v424_v5 = vld [vmem:[#allocation8 + $0x18] sm:$0xff]  ;;  %s701_s26 = sshll.u32 %s1052_s28, 3  ;;  %s340_s9 = scalar_lea.vmem [#allocation10], %s1153_s3 }
  0x4e   : > { %375 = vmatpush.msra.mxu0 %v346_v1  ;;  %v341_v4 = vld [vmem:[%s286_s16] sm:$0xff]  ;;  %v421_v9 = vld [vmem:[#allocation8] sm:$0xff]  ;;  %v422_v16 = vld [vmem:[#allocation8 + $0x8] sm:$0xff]  ;;  %s560_s11 = scalar_lea.hbm %s1234_s6, %s701_s26  ;;  %s562_s10 = sshll.u32 %s340_s9, 4  ;;  %s563_s10 = int_to_ptr.vmem [resolvable:$true] %s562_s10 }
  0x4f   : > { %v431_v6 = vld [vmem:[#allocation8 + $0x50] sm:$0xff]  ;;  %450 = vmatpush.msra.mxu3 %v427_v2  ;;  %v344_v8 = vld [vmem:[#allocation7 + $0x8] sm:$0xff]  ;;  %v1176_v11 = vld [vmem:[%s296_s13] sm:$0xff]  ;;  %s564_s12 = sshll.u32 %s560_s11, 4  ;;  %s550_s28 = scalar_lea.sflag [#allocation4], %s1150_s2  ;;  %s565_s12 = int_to_ptr.hbm [resolvable:$true] %s564_s12 }
  0x50   : > { %376 = vmatpush.msra.mxu0 %v343_v3  ;;  %v347_v7 = vld [vmem:[#allocation7 + $0x20] sm:$0xff]  ;;  %v428_v10 = vld [vmem:[#allocation8 + $0x38] sm:$0xff]  ;;  %v425_v13 = vld [vmem:[#allocation8 + $0x20] sm:$0xff]  ;;  %s923_s17 = sshra.s32 %s565_s12, 4  ;;  %s929_s3 = scalar_lea.hbm %s1234_s6, 16  ;;  %s924_s17 = int_to_ptr.hbm [resolvable:$true] %s923_s17 }
  0x51   : > { %692 = vmatmul.msk.f32.vlgmr.msra.gmra.mxu0 %vm357_vm0, %v341_v4  ;;  %395 = vmatpush.msra.mxu1 %v347_v7  ;;  %v348_v12 = vld [vmem:[#allocation7 + $0x28] sm:$0xff]  ;;  %v345_v15 = vld [vmem:[#allocation7 + $0x10] sm:$0xff]  ;;  %v426_v18 = vld [vmem:[#allocation8 + $0x28] sm:$0xff]  ;;  %s925_s19 = scalar_lea.hbm %s924_s17, 8  ;;  %p930_p7 = scmp.lt.s32.totalorder %s924_s17, %s1234_s6 }
  0x52   : > { %451 = vmatpush.msra.mxu3 %v424_v5  ;;  %469 = vmatpush.msrb.mxu0 %v431_v6  ;;  %v432_v14 = vld [vmem:[#allocation8 + $0x58] sm:$0xff]  ;;  %v429_v17 = vld [vmem:[#allocation8 + $0x40] sm:$0xff]  ;;  %v423_v19 = vld [vmem:[#allocation8 + $0x10] sm:$0xff]  ;;  %p926_p1 = scmp.ne.s32.totalorder %s924_s17, %s925_s19  ;;  %p931_p9 = scmp.lt.s32.totalorder %s929_s3, %s925_s19 }
  0x53   : > { %396 = vmatpush.msra.mxu1 %v344_v8  ;;  %415 = vmatpush.msra.mxu2 %v348_v12  ;;  %v349_v20 = vld [vmem:[%s1232_s4] sm:$0x7] }
  0x54   : > { %452 = vmatpush.msra.mxu3 %v421_v9  ;;  %470 = vmatpush.msrb.mxu0 %v428_v10  ;;  %v352_v22 = vperm.slane %v349_v20, 1  ;;  %v351_v23 = vperm.slane %v349_v20, 0  ;;  %v778_v41 = vld [vmem:[%s1233_s5] ss:$0 sm:$0xff]  ;;  %v353_v47 = vperm.slane %v349_v20, 2  ;;  %p927_p3 = pnand %p926_p1, %p1097_p4  ;;  %p932_p8 = por %p931_p9, %p930_p7 }
  0x55   : > { %695 = vmatmul.msk.f32.vlgmr.msra.gmra.mxu3 %vm433_vm1, %v1176_v11  ;;  %693 = vmatmul.msk.f32.vlgmr.msra.gmra.mxu1 %vm357_vm0, %v341_v4 }
  0x56   : > { %471 = vmatpush.msrb.mxu0 %v425_v13  ;;  %489 = vmatpush.msrb.mxu1 %v432_v14  ;;  %p928_p12 = pneg %p927_p3 }
  0x57   : > { %416 = vmatpush.msra.mxu2 %v345_v15 }
  0x58   : > { %472 = vmatpush.msrb.mxu0 %v422_v16  ;;  %490 = vmatpush.msrb.mxu1 %v429_v17  ;;  %p933_p10 = pnand %p932_p8, %p928_p12 }
  0x59   : > { %696 = vmatmul.msk.f32.vlgmr.msrb.gmra.mxu0 %vm433_vm1, %v1176_v11  ;;  %694 = vmatmul.msk.f32.vlgmr.msra.gmra.mxu2 %vm357_vm0, %v341_v4 }
  0x5a   : > { %491 = vmatpush.msrb.mxu1 %v426_v18 }
  0x5c   : > { %492 = vmatpush.msrb.mxu1 %v423_v19 }
  0x5d   : > { %697 = vmatmul.msk.f32.vlgmr.msrb.gmra.mxu1 %vm433_vm1, %v1176_v11 }
  0xce   : > { %v378_v21 = vpop.f32.mrf.mxu0 }
  0xcf   : > { %v379_v26 = vadd.f32 %v378_v21, %v351_v23 }
  0xd2   : > { %v398_v24 = vpop.f32.mrf.mxu1 }
  0xd3   : > { %v399_v25 = vadd.f32 %v398_v24, %v352_v22 }
  0xd6   : > { %v474_v27 = vpop.f32.mrf.mxu0 }
  0xd7   : > { %v517_v28 = vadd.f32 %v474_v27, %v399_v25 }
  0xd8   : > { %v454_v29 = vpop.f32.mrf.mxu3 }
  0xd9   : > { %v497_v30 = vadd.f32 %v454_v29, %v379_v26  ;;  %v699_v31 = vmul.f32 -1.442695, %v517_v28 }
  0xda   : > { %v494_v43 = vpop.f32.mrf.mxu1 }
  0xdb   : > { %v698_v32 = vmul.f32 -1.442695, %v497_v30  ;;  %779 = vpow2.f32 %v699_v31  ;;  %v541_v50 = vadd.f32 %v778_v41, %v494_v43 }
  0xdc   : > { %v418_v48 = vpop.f32.mrf.mxu2 }
  0xdd   : > { %781 = vpow2.f32 %v698_v32  ;;  %v419_v54 = vadd.f32 %v418_v48, %v353_v47 }
  0xe1   : > { %v780_v33 = vpop.eup %779 }
  0xe2   : > { %v521_v35 = vadd.f32 1.0, %v780_v33 }
  0xe3   : > { %v782_v34 = vpop.eup %781 }
  0xe4   : > { %v501_v36 = vadd.f32 1.0, %v782_v34  ;;  %vm527_vm6 = vweird.f32 %v521_v35  ;;  %v533_v59 = vand.u32 2147483648, %v521_v35  ;;  %v531_v61 = vand.u32 2147483647, %v521_v35 }
  0xe6   : > { %783 = vrcp.f32 %v501_v36  ;;  %v513_v44 = vand.u32 2147483648, %v501_v36  ;;  %v511_v46 = vand.u32 2147483647, %v501_v36  ;;  %vm507_vm3 = vweird.f32 %v501_v36 }
  0xe7   : > { %785 = vrcp.f32 %v521_v35  ;;  %v534_v62 = vor.u32 1.1754944e-38, %v533_v59  ;;  %vm532_vm9 = vcmp.eq.f32.partialorder %v531_v61, 8.507059e+37 }
  0xe8   : > { %v514_v52 = vor.u32 1.1754944e-38, %v513_v44  ;;  %vm512_vm5 = vcmp.eq.f32.partialorder %v511_v46, 8.507059e+37 }
  0xec   : > { %v784_v37 = vpop.eup %783 }
  0xed   : > { %v786_v38 = vpop.eup %785  ;;  %v503_v39 = vmul.f32 %v784_v37, %v501_v36  ;;  %vm508_vm2 = vweird.f32 %v784_v37 }
  0xee   : > { %v523_v42 = vmul.f32 %v786_v38, %v521_v35  ;;  %vm509_vm4 = vmor %vm507_vm3, %vm508_vm2  ;;  %vm528_vm7 = vweird.f32 %v786_v38 }
  0xef   : > { %v504_v40 = vsub.f32 1.0, %v503_v39  ;;  %vm529_vm8 = vmor %vm527_vm6, %vm528_vm7 }
  0xf0   : > { %v524_v51 = vsub.f32 1.0, %v523_v42 }
  0xf1   : > { %v505_v45 = vmul.f32 %v784_v37, %v504_v40 }
  0xf2   : > { %v525_v57 = vmul.f32 %v786_v38, %v524_v51 }
  0xf3   : > { %v506_v49 = vadd.f32 %v784_v37, %v505_v45 }
  0xf4   : > { %v526_v60 = vadd.f32 %v786_v38, %v525_v57 }
  0xf5   : > { %v510_v53 = vsel %vm509_vm4, %v784_v37, %v506_v49 }
  0xf6   : > { %v515_v55 = vsel %vm512_vm5, %v514_v52, %v510_v53  ;;  %v530_v63 = vsel %vm529_vm8, %v786_v38, %v526_v60 }
  0xf7   : > { %v542_v56 = vmul.f32 %v541_v50, %v515_v55  ;;  %v535_v2 = vsel %vm532_vm9, %v534_v62, %v530_v63 }
  0xf9   : > { %v543_v58 = vadd.f32 %v542_v56, %v419_v54 }
  0xfb   : > { %787 = vtanh.f32 %v543_v58 }
 0x101   : > { %v788_v0 = vpop.eup %787 }
 0x102   : > { %v545_v1 = vsub.f32 %v1176_v11, %v788_v0 }
 0x104   : > { %v546_v3 = vmul.f32 %v545_v1, %v535_v2 }
 0x106   : > { %v547_v4 = vadd.f32 %v788_v0, %v546_v3 }
 0x108   : > { %548 = vst.msk [vmem:[%s340_s9] sm:$0xff] %vm433_vm1, %v547_v4 }
 0x109   : > { %936 = shalt.err (!%p933_p10)
}
 0x10a   : > { %716 = dma.vmem_to_hbm [thread:$0]  (%p1097_p4), %s563_s10, 128, %s565_s12, %s550_s28  }
 0x10b PF: > { %s576_s2 = sand.u32 1, %s975_s21   ;;  %p1251_p11 = scmp.ge.s32.totalorder %s987_s24, 2 }
 0x10c   : > { %s577_s13 = scalar_lea.sflag [#allocation4], %s576_s2 }
 0x10d   : > { %p733_p5 = pnand %p1251_p11, %p1101_p6 }
 0x10f   : > { %p734_p13 = pneg %p733_p5 }
 0x111   : > { %970 = dma.done.wait (%p734_p13), %s577_s13, 128  }
 0x112   : > { %972 = vsyncadd (%p734_p13), %s577_s13, 4294967168  ;;  %s1252_s24 = sld [smem:[#allocation17_spill]]  ;;  %s1255_s21 = smov %s979_s22 }
 0x113   : > { %s1253_s25 = sld [smem:[#allocation16_spill]] }
 0x114   : > { %s1254_s23 = sld [smem:[#allocation18_spill]] }
 0x118   : > { %p23_p0 = scmp.ge.s32.totalorder %s1252_s24, 4  }
 0x119   : > { %s1256_s22 = smov %s1253_s25 }
 0x11a   :  { %25 = sbr.rel (!%p23_p0) target bundleno = 11 (0xb), region = 110 }
 0x11f   :  { %583 = vsyncpa [#allocation3], 1 }
 0x120   :  { %585 = vsyncpa [#allocation3 + $0x1], 1 }
 0x121   :  { %586 = vsyncpa [#allocation6], 1 }
 0x122   :  { %588 = vsyncpa [#allocation6 + $0x1], 1 }
 0x123   :  { %589 = vsyncpa [#allocation9], 1 }
 0x124   :  { %590 = vsyncpa [#allocation4], 1 }
 0x125   :  { %592 = vsyncpa [#allocation4 + $0x1], 1 }

// kernel: tpu_custom_call.1
= control target key start
LH: loop header
LB: loop body
LE: loop exit
PB: predicated region body
PF: predicated region fallthrough
CT: control target
= control target key end

     0   :  { %s1228_s0 = inlined_call_operand.hbm [shape: f32[16,16], index: 0, kind: input, shape index: {}]   ;;  %s1229_s1 = inlined_call_operand.hbm [shape: f32[16,32], index: 1, kind: input, shape index: {}]   ;;  %s1230_s2 = inlined_call_operand.hbm [shape: f32[16,384], index: 2, kind: input, shape index: {}]   ;;  %s1231_s3 = inlined_call_operand.hbm [shape: f32[32,384], index: 3, kind: input, shape index: {}]   ;;  %s1232_s4 = inlined_call_operand.vmem [shape: f32[1,384], index: 4, kind: input, shape index: {}]   ;;  %s1233_s5 = inlined_call_operand.vmem [shape: f32[1,128], index: 5, kind: input, shape index: {}]   ;;  %s1234_s6 = inlined_call_operand.hbm [shape: f32[16,32], index: 6, kind: output, shape index: {}]  }
   0x1   :  { %1238 = sst [smem:[#allocation19_spill]] %s1230_s2 }
   0x2   :  { %1239 = sst [smem:[#allocation20_spill]] %s1231_s3 }
   0x3   :  { %11 = vsyncpa [#allocation3], 0 }
   0x4   :  { %13 = vsyncpa [#allocation3 + $0x1], 0 }
   0x5   :  { %14 = vsyncpa [#allocation6], 0 }
   0x6   :  { %16 = vsyncpa [#allocation6 + $0x1], 0 }
   0x7   :  { %17 = vsyncpa [#allocation9], 0 }
   0x8   :  { %18 = vsyncpa [#allocation4], 0 }
   0x9   :  { %20 = vsyncpa [#allocation4 + $0x1], 0  ;;  %s1028_s21 = smov 0   ;;  %s1030_s22 = smov 0  }
   0xa   :  { %s1032_s23 = smov 0   ;;  %s1034_s24 = smov 0  }
   0xb LB: > { %1240 = sst [smem:[#allocation16_spill]] %s983_s23  ;;  %s1052_s28 = sadd.s32 4294967295, %s987_s24   ;;  %s987_s24 = sphi %s1034_s24, %s1252_s24   ;;  %s983_s23 = sphi %s1032_s23, %s1254_s23   ;;  %s979_s22 = sphi %s1030_s22, %s1256_s22   ;;  %s975_s21 = sphi %s1028_s21, %s1255_s21  }
   0xc   : > { %s1241_s2 = sld [smem:[#allocation19_spill]]  ;;  %p678_p0 = scmp.ge.s32.totalorder %s987_s24, 1 }
   0xd   : > { %p47_p1 = scmp.eq.s32.totalorder %s1052_s28, 0  ;;  %p193_p2 = scmp.lt.s32.totalorder %s987_s24, 3 }
   0xe   : > { %s989_s30 = smov [#allocation7]   ;;  %s1243_s3 = sld [smem:[#allocation20_spill]] }
   0xf   : > { %p1057_p3 = pnand %p678_p0, %p193_p2  ;;  %s206_s7 = sshll.u32 %s989_s30, 4  ;;  %s207_s7 = int_to_ptr.vmem [resolvable:$true] %s206_s7 }
  0x10   : > { %s990_s11 = smov [#allocation8]   ;;  %s991_s13 = smov 384  }
  0x11   : > { %p718_p4 = pneg %p1057_p3  ;;  %s220_s12 = sshll.u32 %s990_s11, 4  ;;  %s221_s12 = int_to_ptr.vmem [resolvable:$true] %s220_s12 }
  0x12   : > { %s204_s27 = sshll.u32 %s1241_s2, 4  ;;  %s992_s14 = smov 24   ;;  %s205_s27 = int_to_ptr.hbm [resolvable:$true] %s204_s27 }
  0x13   : > { %p719_p6 = pnand %p718_p4, %p47_p1  ;;  %s677_s15 = sadd.s32 4294967294, %s987_s24  }
  0x14   : > { %s218_s10 = sshll.u32 %s1243_s3, 4  ;;  %s1071_s16 = sadd.s32 1, %s987_s24   ;;  %s219_s10 = int_to_ptr.hbm [resolvable:$true] %s218_s10 }
  0x15   : > { %721 = dma.hbm_to_vmem [thread:$0]  (!%p719_p6), %s205_s27, 768, %s207_s7, [#allocation6], %s991_s13, %s991_s13, %s992_s14  }
  0x16   : > { %724 = dma.hbm_to_vmem [thread:$0]  (!%p719_p6), %s219_s10, 1536, %s221_s12, [#allocation9], %s991_s13, %s991_s13, %s992_s14  }
  0x17   : > { %1244 = sst [smem:[#allocation17_spill]] %s1071_s16  ;;  %s30_s17 = ssub.s32 %s987_s24, %s1071_s16 }
  0x18   : > { %s33_s18 = sadd.s32 1, %s983_s23  ;;  %p31_p7 = scmp.eq.s32.totalorder %s30_s17, 0 }
  0x19   : > { %p40_p8 = scmp.ne.s32.totalorder %s983_s23, %s979_s22  ;;  %p41_p9 = scmp.eq.s32.totalorder %s987_s24, 0 }
  0x1a   : > { %p46_p10 = scmp.ne.s32.totalorder %s979_s22, %s975_s21  ;;  %p180_p13 = scmp.eq.s32.totalorder %s1052_s28, 1 }
  0x1b   : > { %s1082_s19 = scalar_select %p31_p7, %s983_s23, %s33_s18  }
  0x1c   : > { %p1084_p11 = por %p41_p9, %p40_p8  ;;  %p1090_p12 = por %p47_p1, %p46_p10 }
  0x1d   : > { %1245 = sst [smem:[#allocation18_spill]] %s1082_s19  ;;  %p186_p0 = scmp.eq.s32.totalorder %s677_s15, 1 }
  0x1e   : > { %p738_p2 = scmp.lt.s32.totalorder %s987_s24, 2  ;;  %s240_s26 = sand.u32 1, %s983_s23  }
  0x1f   : > { %p1097_p4 = por %p180_p13, %p40_p8  ;;  %p1101_p6 = por %p186_p0, %p46_p10 }
  0x20   : > { %s1105_s7 = sshll.u32 %s240_s26, 3  ;;  %s683_s8 = sshll.u32 %s987_s24, 3 }
  0x21   : > { %s248_s11 = scalar_lea.hbm %s1228_s0, %s683_s8  ;;  %s244_s12 = scalar_lea.vmem [#allocation2], %s1105_s7 }
  0x22   : > { %s252_s13 = sshll.u32 %s244_s12, 4  ;;  %s250_s14 = sshll.u32 %s248_s11, 4  ;;  %s253_s13 = int_to_ptr.vmem [resolvable:$true] %s252_s13  ;;  %s251_s14 = int_to_ptr.hbm [resolvable:$true] %s250_s14 }
  0x23   : > { %p1114_p7 = pnand %p738_p2, %p1084_p11  ;;  %s267_s2 = scalar_lea.hbm %s1229_s1, %s683_s8 }
  0x24   : > { %s259_s3 = sand.u32 1, %s987_s24   ;;  %s241_s19 = scalar_lea.sflag [#allocation3], %s240_s26 }
  0x25   : > { %s849_s9 = sshra.s32 %s251_s14, 4  ;;  %p853_p9 = pneg %p1114_p7  ;;  %s850_s9 = int_to_ptr.hbm [resolvable:$true] %s849_s9 }
  0x26   : > { %s851_s10 = scalar_lea.hbm %s850_s9, 8  ;;  %s856_s12 = scalar_lea.hbm %s1228_s0, 16 }
  0x27   : > { %p852_p8 = scmp.ne.s32.totalorder %s850_s9, %s851_s10  ;;  %p857_p13 = scmp.lt.s32.totalorder %s850_s9, %s1228_s0 }
  0x28   : > { %p858_p0 = scmp.lt.s32.totalorder %s856_s12, %s851_s10 }
  0x29   : > { %p854_p10 = pnand %p853_p9, %p852_p8 }
  0x2a   : > { %p859_p2 = por %p858_p0, %p857_p13 }
  0x2b   : > { %p855_p11 = pneg %p854_p10 }
  0x2d   : > { %p860_p5 = pnand %p859_p2, %p855_p11 }
  0x2f   : > { %863 = shalt.err (!%p860_p5)
}
  0x30   : > { %728 = dma.hbm_to_vmem [thread:$0]  (!%p1114_p7), %s251_s14, 128, %s253_s13, %s241_s19  }
  0x31   : > { %s269_s26 = sshll.u32 %s267_s2, 4  ;;  %s263_s8 = scalar_lea.vmem [#allocation5], %s1105_s7  ;;  %s270_s26 = int_to_ptr.hbm [resolvable:$true] %s269_s26 }
  0x32   : > { %s271_s23 = sshll.u32 %s263_s8, 4  ;;  %s260_s20 = scalar_lea.sflag [#allocation6], %s259_s3  ;;  %s272_s23 = int_to_ptr.vmem [resolvable:$true] %s271_s23 }
  0x33   : > { %s879_s11 = sshra.s32 %s270_s26, 4  ;;  %s886_s12 = scalar_lea.hbm %s1229_s1, 16  ;;  %s880_s11 = int_to_ptr.hbm [resolvable:$true] %s879_s11 }
  0x34   : > { %s881_s16 = scalar_lea.hbm %s880_s11, 8  ;;  %p887_p5 = scmp.lt.s32.totalorder %s880_s11, %s1229_s1 }
  0x35   : > { %p882_p8 = scmp.ne.s32.totalorder %s880_s11, %s881_s16  ;;  %p888_p13 = scmp.lt.s32.totalorder %s886_s12, %s881_s16 }
  0x37   : > { %p884_p10 = pnand %p882_p8, %p853_p9  ;;  %p889_p0 = por %p888_p13, %p887_p5 }
  0x39   : > { %p885_p11 = pneg %p884_p10 }
  0x3b   : > { %p890_p2 = pnand %p889_p0, %p885_p11 }
  0x3d   : > { %893 = shalt.err (!%p890_p2)
}
  0x3e   : > { %731 = dma.hbm_to_vmem [thread:$0]  (!%p1114_p7), %s270_s26, 128, %s272_s23, %s260_s20  }
  0x3f   : > { %280 = sbr.rel (%p1057_p3) target bundleno = 267 (0x10b), region = 44  ;;  %s1150_s2 = sand.u32 (!%p1057_p3), 1, %s979_s22  }
  0x40   : > { %s1153_s3 = sshll.u32 (!%p1057_p3), %s1150_s2, 3  ;;  %s283_s7 = scalar_lea.sflag (!%p1057_p3), [#allocation3], %s1150_s2 }
  0x41   : > { %s286_s16 = scalar_lea.vmem (!%p1057_p3), [#allocation2], %s1153_s3 }
  0x44   : > { %954 = dma.done.wait (%p1090_p12), %s283_s7, 128  }
  0x45   : > { %956 = vsyncadd (%p1090_p12), %s283_s7, 4294967168  ;;  %s292_s23 = sand.u32 1, %s1052_s28   ;;  %s296_s13 = scalar_lea.vmem [#allocation5], %s1153_s3 }
  0x46   : > { %s293_s29 = scalar_lea.sflag [#allocation6], %s292_s23 }
  0x47   : > { %958 = dma.done.wait (%p1090_p12), %s293_s29, 128  }
  0x48   : > { %960 = vsyncadd (%p1090_p12), %s293_s29, 4294967168 }
  0x49   : > { %962 = dma.done.wait (%p47_p1), [#allocation6], 768  }
  0x4a   : > { %964 = vsyncadd (%p47_p1), [#allocation6], 4294966528 }
  0x4b   : > { %966 = dma.done.wait (%p47_p1), [#allocation9], 1536  }
  0x4c   : > { %968 = vsyncadd (%p47_p1), [#allocation9], 4294965760  ;;  %v430_v0 = vld [vmem:[#allocation8 + $0x48] sm:$0xff]  ;;  %v427_v2 = vld [vmem:[#allocation8 + $0x30] sm:$0xff]  ;;  %vm357_vm0 = vcmask 130048   ;;  %vm433_vm1 = vcmask 261120  }
  0x4d   : > { %v346_v1 = vld [vmem:[#allocation7 + $0x18] sm:$0xff]  ;;  %449 = vmatpush.msra.mxu3 %v430_v0  ;;  %v343_v3 = vld [vmem:[#allocation7] sm:$0xff]  ;;  %v424_v5 = vld [vmem:[#allocation8 + $0x18] sm:$0xff]  ;;  %s701_s26 = sshll.u32 %s1052_s28, 3  ;;  %s340_s9 = scalar_lea.vmem [#allocation10], %s1153_s3 }
  0x4e   : > { %375 = vmatpush.msra.mxu0 %v346_v1  ;;  %v341_v4 = vld [vmem:[%s286_s16] sm:$0xff]  ;;  %v421_v9 = vld [vmem:[#allocation8] sm:$0xff]  ;;  %v422_v16 = vld [vmem:[#allocation8 + $0x8] sm:$0xff]  ;;  %s560_s11 = scalar_lea.hbm %s1234_s6, %s701_s26  ;;  %s562_s10 = sshll.u32 %s340_s9, 4  ;;  %s563_s10 = int_to_ptr.vmem [resolvable:$true] %s562_s10 }
  0x4f   : > { %v431_v6 = vld [vmem:[#allocation8 + $0x50] sm:$0xff]  ;;  %450 = vmatpush.msra.mxu3 %v427_v2  ;;  %v344_v8 = vld [vmem:[#allocation7 + $0x8] sm:$0xff]  ;;  %v1176_v11 = vld [vmem:[%s296_s13] sm:$0xff]  ;;  %s564_s12 = sshll.u32 %s560_s11, 4  ;;  %s550_s28 = scalar_lea.sflag [#allocation4], %s1150_s2  ;;  %s565_s12 = int_to_ptr.hbm [resolvable:$true] %s564_s12 }
  0x50   : > { %376 = vmatpush.msra.mxu0 %v343_v3  ;;  %v347_v7 = vld [vmem:[#allocation7 + $0x20] sm:$0xff]  ;;  %v428_v10 = vld [vmem:[#allocation8 + $0x38] sm:$0xff]  ;;  %v425_v13 = vld [vmem:[#allocation8 + $0x20] sm:$0xff]  ;;  %s923_s17 = sshra.s32 %s565_s12, 4  ;;  %s929_s3 = scalar_lea.hbm %s1234_s6, 16  ;;  %s924_s17 = int_to_ptr.hbm [resolvable:$true] %s923_s17 }
  0x51   : > { %692 = vmatmul.msk.f32.vlgmr.msra.gmra.mxu0 %vm357_vm0, %v341_v4  ;;  %395 = vmatpush.msra.mxu1 %v347_v7  ;;  %v348_v12 = vld [vmem:[#allocation7 + $0x28] sm:$0xff]  ;;  %v345_v15 = vld [vmem:[#allocation7 + $0x10] sm:$0xff]  ;;  %v426_v18 = vld [vmem:[#allocation8 + $0x28] sm:$0xff]  ;;  %s925_s19 = scalar_lea.hbm %s924_s17, 8  ;;  %p930_p7 = scmp.lt.s32.totalorder %s924_s17, %s1234_s6 }
  0x52   : > { %451 = vmatpush.msra.mxu3 %v424_v5  ;;  %469 = vmatpush.msrb.mxu0 %v431_v6  ;;  %v432_v14 = vld [vmem:[#allocation8 + $0x58] sm:$0xff]  ;;  %v429_v17 = vld [vmem:[#allocation8 + $0x40] sm:$0xff]  ;;  %v423_v19 = vld [vmem:[#allocation8 + $0x10] sm:$0xff]  ;;  %p926_p1 = scmp.ne.s32.totalorder %s924_s17, %s925_s19  ;;  %p931_p9 = scmp.lt.s32.totalorder %s929_s3, %s925_s19 }
  0x53   : > { %396 = vmatpush.msra.mxu1 %v344_v8  ;;  %415 = vmatpush.msra.mxu2 %v348_v12  ;;  %v349_v20 = vld [vmem:[%s1232_s4] sm:$0x7] }
  0x54   : > { %452 = vmatpush.msra.mxu3 %v421_v9  ;;  %470 = vmatpush.msrb.mxu0 %v428_v10  ;;  %v352_v22 = vperm.slane %v349_v20, 1  ;;  %v351_v23 = vperm.slane %v349_v20, 0  ;;  %v778_v41 = vld [vmem:[%s1233_s5] ss:$0 sm:$0xff]  ;;  %v353_v47 = vperm.slane %v349_v20, 2  ;;  %p927_p3 = pnand %p926_p1, %p1097_p4  ;;  %p932_p8 = por %p931_p9, %p930_p7 }
  0x55   : > { %695 = vmatmul.msk.f32.vlgmr.msra.gmra.mxu3 %vm433_vm1, %v1176_v11  ;;  %693 = vmatmul.msk.f32.vlgmr.msra.gmra.mxu1 %vm357_vm0, %v341_v4 }
  0x56   : > { %471 = vmatpush.msrb.mxu0 %v425_v13  ;;  %489 = vmatpush.msrb.mxu1 %v432_v14  ;;  %p928_p12 = pneg %p927_p3 }
  0x57   : > { %416 = vmatpush.msra.mxu2 %v345_v15 }
  0x58   : > { %472 = vmatpush.msrb.mxu0 %v422_v16  ;;  %490 = vmatpush.msrb.mxu1 %v429_v17  ;;  %p933_p10 = pnand %p932_p8, %p928_p12 }
  0x59   : > { %696 = vmatmul.msk.f32.vlgmr.msrb.gmra.mxu0 %vm433_vm1, %v1176_v11  ;;  %694 = vmatmul.msk.f32.vlgmr.msra.gmra.mxu2 %vm357_vm0, %v341_v4 }
  0x5a   : > { %491 = vmatpush.msrb.mxu1 %v426_v18 }
  0x5c   : > { %492 = vmatpush.msrb.mxu1 %v423_v19 }
  0x5d   : > { %697 = vmatmul.msk.f32.vlgmr.msrb.gmra.mxu1 %vm433_vm1, %v1176_v11 }
  0xce   : > { %v378_v21 = vpop.f32.mrf.mxu0 }
  0xcf   : > { %v379_v26 = vadd.f32 %v378_v21, %v351_v23 }
  0xd2   : > { %v398_v24 = vpop.f32.mrf.mxu1 }
  0xd3   : > { %v399_v25 = vadd.f32 %v398_v24, %v352_v22 }
  0xd6   : > { %v474_v27 = vpop.f32.mrf.mxu0 }
  0xd7   : > { %v517_v28 = vadd.f32 %v474_v27, %v399_v25 }
  0xd8   : > { %v454_v29 = vpop.f32.mrf.mxu3 }
  0xd9   : > { %v497_v30 = vadd.f32 %v454_v29, %v379_v26  ;;  %v699_v31 = vmul.f32 -1.442695, %v517_v28 }
  0xda   : > { %v494_v43 = vpop.f32.mrf.mxu1 }
  0xdb   : > { %v698_v32 = vmul.f32 -1.442695, %v497_v30  ;;  %779 = vpow2.f32 %v699_v31  ;;  %v541_v50 = vadd.f32 %v778_v41, %v494_v43 }
  0xdc   : > { %v418_v48 = vpop.f32.mrf.mxu2 }
  0xdd   : > { %781 = vpow2.f32 %v698_v32  ;;  %v419_v54 = vadd.f32 %v418_v48, %v353_v47 }
  0xe1   : > { %v780_v33 = vpop.eup %779 }
  0xe2   : > { %v521_v35 = vadd.f32 1.0, %v780_v33 }
  0xe3   : > { %v782_v34 = vpop.eup %781 }
  0xe4   : > { %v501_v36 = vadd.f32 1.0, %v782_v34  ;;  %vm527_vm6 = vweird.f32 %v521_v35  ;;  %v533_v59 = vand.u32 2147483648, %v521_v35  ;;  %v531_v61 = vand.u32 2147483647, %v521_v35 }
  0xe6   : > { %783 = vrcp.f32 %v501_v36  ;;  %v513_v44 = vand.u32 2147483648, %v501_v36  ;;  %v511_v46 = vand.u32 2147483647, %v501_v36  ;;  %vm507_vm3 = vweird.f32 %v501_v36 }
  0xe7   : > { %785 = vrcp.f32 %v521_v35  ;;  %v534_v62 = vor.u32 1.1754944e-38, %v533_v59  ;;  %vm532_vm9 = vcmp.eq.f32.partialorder %v531_v61, 8.507059e+37 }
  0xe8   : > { %v514_v52 = vor.u32 1.1754944e-38, %v513_v44  ;;  %vm512_vm5 = vcmp.eq.f32.partialorder %v511_v46, 8.507059e+37 }
  0xec   : > { %v784_v37 = vpop.eup %783 }
  0xed   : > { %v786_v38 = vpop.eup %785  ;;  %v503_v39 = vmul.f32 %v784_v37, %v501_v36  ;;  %vm508_vm2 = vweird.f32 %v784_v37 }
  0xee   : > { %v523_v42 = vmul.f32 %v786_v38, %v521_v35  ;;  %vm509_vm4 = vmor %vm507_vm3, %vm508_vm2  ;;  %vm528_vm7 = vweird.f32 %v786_v38 }
  0xef   : > { %v504_v40 = vsub.f32 1.0, %v503_v39  ;;  %vm529_vm8 = vmor %vm527_vm6, %vm528_vm7 }
  0xf0   : > { %v524_v51 = vsub.f32 1.0, %v523_v42 }
  0xf1   : > { %v505_v45 = vmul.f32 %v784_v37, %v504_v40 }
  0xf2   : > { %v525_v57 = vmul.f32 %v786_v38, %v524_v51 }
  0xf3   : > { %v506_v49 = vadd.f32 %v784_v37, %v505_v45 }
  0xf4   : > { %v526_v60 = vadd.f32 %v786_v38, %v525_v57 }
  0xf5   : > { %v510_v53 = vsel %vm509_vm4, %v784_v37, %v506_v49 }
  0xf6   : > { %v515_v55 = vsel %vm512_vm5, %v514_v52, %v510_v53  ;;  %v530_v63 = vsel %vm529_vm8, %v786_v38, %v526_v60 }
  0xf7   : > { %v542_v56 = vmul.f32 %v541_v50, %v515_v55  ;;  %v535_v2 = vsel %vm532_vm9, %v534_v62, %v530_v63 }
  0xf9   : > { %v543_v58 = vadd.f32 %v542_v56, %v419_v54 }
  0xfb   : > { %787 = vtanh.f32 %v543_v58 }
 0x101   : > { %v788_v0 = vpop.eup %787 }
 0x102   : > { %v545_v1 = vsub.f32 %v1176_v11, %v788_v0 }
 0x104   : > { %v546_v3 = vmul.f32 %v545_v1, %v535_v2 }
 0x106   : > { %v547_v4 = vadd.f32 %v788_v0, %v546_v3 }
 0x108   : > { %548 = vst.msk [vmem:[%s340_s9] sm:$0xff] %vm433_vm1, %v547_v4 }
 0x109   : > { %936 = shalt.err (!%p933_p10)
}
 0x10a   : > { %716 = dma.vmem_to_hbm [thread:$0]  (%p1097_p4), %s563_s10, 128, %s565_s12, %s550_s28  }
 0x10b PF: > { %s576_s2 = sand.u32 1, %s975_s21   ;;  %p1251_p11 = scmp.ge.s32.totalorder %s987_s24, 2 }
 0x10c   : > { %s577_s13 = scalar_lea.sflag [#allocation4], %s576_s2 }
 0x10d   : > { %p733_p5 = pnand %p1251_p11, %p1101_p6 }
 0x10f   : > { %p734_p13 = pneg %p733_p5 }
 0x111   : > { %970 = dma.done.wait (%p734_p13), %s577_s13, 128  }
 0x112   : > { %972 = vsyncadd (%p734_p13), %s577_s13, 4294967168  ;;  %s1252_s24 = sld [smem:[#allocation17_spill]]  ;;  %s1255_s21 = smov %s979_s22 }
 0x113   : > { %s1253_s25 = sld [smem:[#allocation16_spill]] }
 0x114   : > { %s1254_s23 = sld [smem:[#allocation18_spill]] }
 0x118   : > { %p23_p0 = scmp.ge.s32.totalorder %s1252_s24, 4  }
 0x119   : > { %s1256_s22 = smov %s1253_s25 }
 0x11a   :  { %25 = sbr.rel (!%p23_p0) target bundleno = 11 (0xb), region = 110 }
 0x11f   :  { %583 = vsyncpa [#allocation3], 1 }
 0x120   :  { %585 = vsyncpa [#allocation3 + $0x1], 1 }
 0x121   :  { %586 = vsyncpa [#allocation6], 1 }
 0x122   :  { %588 = vsyncpa [#allocation6 + $0x1], 1 }
 0x123   :  { %589 = vsyncpa [#allocation9], 1 }
 0x124   :  { %590 = vsyncpa [#allocation4], 1 }
 0x125   :  { %592 = vsyncpa [#allocation4 + $0x1], 1 }

</bundles_post_ra>
